<compile_context>
chip_gen: v7x
topology: tpu7x:2x2x1
jax: 0.10.0
libtpu: 0.0.40
codegen_flags: <defaults>
</compile_context>

<pallas_src>
import jax
import jax.numpy as jnp
from jax import lax
from jax.experimental import pallas as pl
from jax.experimental.pallas import tpu as pltpu


def _round_up(x, m):
    return (x + m - 1) // m * m


def _make_kernel(lblk, ea):
    def kernel(d_ref, e_ref, u_ref, out_ref):
        d = d_ref[0]          # [Ld_pad, Da]   augmented (and mask-folded) decoder
        e = e_ref[0]          # [Le_pad, Ea]   augmented (and mask-folded) encoder
        u = u_ref[...]        # [Da, lblk*Ea]  augmented U for this label block

        # One fat MXU matmul covering all labels of this block; bilinear +
        # both linear terms + bias are all folded into the augmented U.
        tmp = jnp.dot(d, u, preferred_element_type=jnp.float32).astype(d.dtype)

        contract_last = (((1,), (1,)), ((), ()))
        for n in range(lblk):
            # Static, 128-aligned lane slice -> plain vreg selection.
            t = tmp[:, n * ea:(n + 1) * ea]                                  # [Ld_pad, Ea]
            score = lax.dot_general(t, e, contract_last,
                                    preferred_element_type=jnp.float32)      # [Ld_pad, Le_pad]
            out_ref[0, n] = score.astype(out_ref.dtype)

    return kernel


def biaffine_attention(input_d, input_e, W_d, W_e, U, b,
                       mask_d=None, mask_e=None,
                       *, label_block=8, out_dtype=None):
    """Pallas TPU implementation of BiaffineAttention.forward (biaffine=True)."""
    # TODO(synk): biaffine=False branch (PyTorch literally computes out_d + out_d + b) not implemented.
    B, Ld, Dd = input_d.shape
    Be, Le, De = input_e.shape
    assert B == Be, "batch sizes of encoder and decoder are required to be equal."
    L = W_d.shape[0]

    compute_dtype = input_d.dtype          # keep bf16 inputs in bf16 (MXU-native)
    if out_dtype is None:
        out_dtype = compute_dtype
    apply_mask = (mask_d is not None) and (mask_e is not None)

    lblk = max(1, min(label_block, L))
    L_pad = _round_up(L, lblk)
    # Hardware-friendly padding (contraction dims to 128, output lanes to 128).
    Da = _round_up(Dd + 1, 128)
    Ea = _round_up(De + 1, 128)
    Ld_pad = _round_up(Ld, 8)
    Le_pad = _round_up(Le, 128)

    # ---- augmented operands (plain-JAX glue, tiny compared to the output) ----
    d_aug = jnp.zeros((B, Ld_pad, Da), compute_dtype)
    d_aug = d_aug.at[:, :Ld, :Dd].set(input_d.astype(compute_dtype))
    d_aug = d_aug.at[:, :Ld, Dd].set(1)

    e_aug = jnp.zeros((B, Le_pad, Ea), compute_dtype)
    e_aug = e_aug.at[:, :Le, :De].set(input_e.astype(compute_dtype))
    e_aug = e_aug.at[:, :Le, De].set(1)

    if apply_mask:
        # Fold masks into the augmented inputs: every energy term passes through
        # exactly one d~ row and one e~ row, so scaling the rows produces
        # mask_d[i] * mask_e[j] * energy exactly. This removes all mask DMAs and
        # all per-label [Ld,Le] VPU mask multiplies from the kernel.
        d_aug = d_aug * mask_d.astype(compute_dtype)[:, :Ld, None].__class__(
            mask_d.astype(compute_dtype)[:, :, None]) if False else (
            d_aug.at[:, :Ld, :].multiply(mask_d.astype(compute_dtype)[:, :, None]))
        e_aug = e_aug.at[:, :Le, :].multiply(mask_e.astype(compute_dtype)[:, :, None])

    # U~ = [[U, W_d^T], [W_e, b]] per label, zero padded, laid out as
    # [Da, L_pad*Ea] so one grid step does a single fat matmul over lblk labels.
    u_aug = jnp.zeros((L_pad, Da, Ea), compute_dtype)
    u_aug = u_aug.at[:L, :Dd, :De].set(U.astype(compute_dtype))
    u_aug = u_aug.at[:L, :Dd, De].set(W_d.astype(compute_dtype))
    u_aug = u_aug.at[:L, Dd, :De].set(W_e.astype(compute_dtype))
    u_aug = u_aug.at[:L, Dd, De].set(b.reshape(L).astype(compute_dtype))
    u_r = u_aug.transpose(1, 0, 2).reshape(Da, L_pad * Ea)

    in_specs = [
        pl.BlockSpec((1, Ld_pad, Da), lambda li, bi: (bi, 0, 0)),   # decoder
        pl.BlockSpec((1, Le_pad, Ea), lambda li, bi: (bi, 0, 0)),   # encoder
        pl.BlockSpec((Da, lblk * Ea), lambda li, bi: (0, li)),      # augmented U
    ]

    # Label blocks outer, batch inner: the (large) U block stays VMEM-resident
    # across the inner batch loop; d/e/output change every inner step.
    grid = (L_pad // lblk, B)

    out = pl.pallas_call(
        _make_kernel(lblk, Ea),
        out_shape=jax.ShapeDtypeStruct((B, L_pad, Ld_pad, Le_pad), out_dtype),
        grid_spec=pltpu.PrefetchScalarGridSpec(
            num_scalar_prefetch=0,
            grid=grid,
            in_specs=in_specs,
            out_specs=pl.BlockSpec((1, lblk, Ld_pad, Le_pad),
                                   lambda li, bi: (bi, li, 0, 0)),
        ),
        compiler_params=pltpu.CompilerParams(
            dimension_semantics=("parallel", "parallel")),
    )(d_aug, e_aug, u_r)

    if (L_pad, Ld_pad, Le_pad) != (L, Ld, Le):
        out = out[:, :L, :Ld, :Le]
    return out


def _reference(input_d, input_e, W_d, W_e, U, b, mask_d=None, mask_e=None):
    out = jnp.einsum('bld,ndk,bmk->bnlm', input_d, U, input_e)
    out = out + jnp.einsum('nd,bld->bnl', W_d, input_d)[:, :, :, None]
    out = out + jnp.einsum('nk,bmk->bnm', W_e, input_e)[:, :, None, :]
    out = out + b[None]                     # b: [L,1,1] -> broadcast
    if mask_d is not None and mask_e is not None:
        out = out * mask_d[:, None, :, None] * mask_e[:, None, None, :]
    return out


if __name__ == "__main__":
    B, Ld, Le = 2, 8, 8
    Dd, De = 32, 32
    L = 3  # num_labels

    key = jax.random.PRNGKey(0)
    k_wd, k_we, k_u, k_d, k_e, k_md, k_me = jax.random.split(key, 7)

    # Deterministic parameter init mirroring reset_parameters():
    #   xavier_normal_(W_d), xavier_normal_(W_e), constant_(b, 0), xavier_uniform_(U)
    std_wd = (2.0 / (L + Dd)) ** 0.5
    std_we = (2.0 / (L + De)) ** 0.5
    W_d = std_wd * jax.random.normal(k_wd, (L, Dd), jnp.float32)
    W_e = std_we * jax.random.normal(k_we, (L, De), jnp.float32)
    b = jnp.zeros((L, 1, 1), jnp.float32)
    lim_u = (6.0 / (Dd * De + L * De)) ** 0.5
    U = jax.random.uniform(k_u, (L, Dd, De), jnp.float32, -lim_u, lim_u)

    input_d = jax.random.normal(k_d, (B, Ld, Dd), jnp.float32)
    input_e = jax.random.normal(k_e, (B, Le, De), jnp.float32)
    mask_d = (jax.random.uniform(k_md, (B, Ld)) > 0.3).astype(jnp.float32)
    mask_e = (jax.random.uniform(k_me, (B, Le)) > 0.3).astype(jnp.float32)

    # 1) float32, masked, label_block=2 (exercises label blocking + label padding).
    out = jax.block_until_ready(
        biaffine_attention(input_d, input_e, W_d, W_e, U, b,
                           mask_d, mask_e, label_block=2))
    ref = _reference(input_d, input_e, W_d, W_e, U, b, mask_d, mask_e)
    assert out.shape == (B, L, Ld, Le), out.shape
    assert jnp.allclose(out, ref, rtol=2e-3, atol=2e-3), \
        f"f32 masked: max abs err {jnp.max(jnp.abs(out - ref))}"

    # 2) float32, no masks (same kernel, no mask folding).
    out_nm = jax.block_until_ready(
        biaffine_attention(input_d, input_e, W_d, W_e, U, b))
    ref_nm = _reference(input_d, input_e, W_d, W_e, U, b)
    assert jnp.allclose(out_nm, ref_nm, rtol=2e-3, atol=2e-3), \
        f"f32 no-mask: max abs err {jnp.max(jnp.abs(out_nm - ref_nm))}"

    # 3) bfloat16 path: bf16 MXU matmuls with f32 accumulation, bf16 output.
    bf = jnp.bfloat16
    out_bf = jax.block_until_ready(
        biaffine_attention(input_d.astype(bf), input_e.astype(bf),
                           W_d.astype(bf), W_e.astype(bf),
                           U.astype(bf), b.astype(bf),
                           mask_d, mask_e))
    assert out_bf.dtype == bf, out_bf.dtype
    ref_bf = _reference(input_d.astype(bf).astype(jnp.float32),
                        input_e.astype(bf).astype(jnp.float32),
                        W_d.astype(bf).astype(jnp.float32),
                        W_e.astype(bf).astype(jnp.float32),
                        U.astype(bf).astype(jnp.float32),
                        b.astype(bf).astype(jnp.float32),
                        mask_d, mask_e)
    err_bf = jnp.max(jnp.abs(out_bf.astype(jnp.float32) - ref_bf))
    assert jnp.allclose(out_bf.astype(jnp.float32), ref_bf, rtol=5e-2, atol=5e-2), \
        f"bf16 masked: max abs err {err_bf}"

    print("KERNEL_OK")
</pallas_src>

<mosaic_0001>
module attributes {stable_mosaic.version = 11 : i64} {
  func.func @kernel(%arg0: i32, %arg1: i32, %arg2: memref<1x8x128xf32, #tpu.memory_space<vmem>>, %arg3: memref<1x128x128xf32, #tpu.memory_space<vmem>>, %arg4: memref<128x256xf32, #tpu.memory_space<vmem>>, %arg5: memref<1x2x8x128xf32, #tpu.memory_space<vmem>>) attributes {dimension_semantics = [#tpu.dimension_semantics<parallel>, #tpu.dimension_semantics<parallel>], iteration_bounds = array<i64: 2, 2>, scalar_prefetch = 0 : i64, scratch_operands = 0 : i64, tpu.core_type = #tpu.core_type<tc>, window_params = [{transform_indices = @transform_0, window_bounds = array<i64: 1, 8, 128>}, {transform_indices = @transform_1, window_bounds = array<i64: 1, 128, 128>}, {transform_indices = @transform_2, window_bounds = array<i64: 128, 256>}, {transform_indices = @transform_3, window_bounds = array<i64: 1, 2, 8, 128>}]} {
    %c0 = arith.constant 0 : index
    %c0_0 = arith.constant 0 : index
    %c0_1 = arith.constant 0 : index
    %0 = vector.load %arg2[%c0, %c0_0, %c0_1] : memref<1x8x128xf32, #tpu.memory_space<vmem>>, vector<1x8x128xf32>
    %1 = vector.shape_cast %0 : vector<1x8x128xf32> to vector<8x128xf32>
    %c0_2 = arith.constant 0 : index
    %c0_3 = arith.constant 0 : index
    %c0_4 = arith.constant 0 : index
    %2 = vector.load %arg3[%c0_2, %c0_3, %c0_4] : memref<1x128x128xf32, #tpu.memory_space<vmem>>, vector<1x128x128xf32>
    %3 = vector.shape_cast %2 : vector<1x128x128xf32> to vector<128x128xf32>
    %c0_5 = arith.constant 0 : index
    %c0_6 = arith.constant 0 : index
    %4 = vector.load %arg4[%c0_5, %c0_6] : memref<128x256xf32, #tpu.memory_space<vmem>>, vector<128x256xf32>
    %cst = arith.constant dense<0.000000e+00> : vector<8x256xf32>
    %5 = tpu.matmul %1, %4, %cst {dimension_numbers = #tpu.dot_dimension_numbers<[1], [0], [0], [1], [0, 0, 1, 1], [], []>} : vector<8x128xf32>, vector<128x256xf32>, vector<8x256xf32> -> vector<8x256xf32>
    %6 = vector.extract_strided_slice %5 {offsets = [0, 0], sizes = [8, 128], strides = [1, 1]} : vector<8x256xf32> to vector<8x128xf32>
    %cst_7 = arith.constant dense<0.000000e+00> : vector<8x128xf32>
    %7 = tpu.matmul %6, %3, %cst_7 {dimension_numbers = #tpu.dot_dimension_numbers<[1], [1], [0], [0], [0, 0, 1, 0], [], []>} : vector<8x128xf32>, vector<128x128xf32>, vector<8x128xf32> -> vector<8x128xf32>
    %c0_8 = arith.constant 0 : index
    %c0_9 = arith.constant 0 : index
    %c0_10 = arith.constant 0 : index
    %c0_11 = arith.constant 0 : index
    %8 = vector.load %arg5[%c0_8, %c0_9, %c0_10, %c0_11] : memref<1x2x8x128xf32, #tpu.memory_space<vmem>>, vector<1x1x8x128xf32>
    %9 = vector.shape_cast %8 : vector<1x1x8x128xf32> to vector<8x128xf32>
    %10 = vector.shape_cast %7 : vector<8x128xf32> to vector<1x1x8x128xf32>
    tpu.vector_store %arg5[%c0_8, %c0_9, %c0_10, %c0_11], %10 {strides = array<i32>} : memref<1x2x8x128xf32, #tpu.memory_space<vmem>>, vector<1x1x8x128xf32>,
    %11 = vector.extract_strided_slice %5 {offsets = [0, 128], sizes = [8, 128], strides = [1, 1]} : vector<8x256xf32> to vector<8x128xf32>
    %cst_12 = arith.constant dense<0.000000e+00> : vector<8x128xf32>
    %12 = tpu.matmul %11, %3, %cst_12 {dimension_numbers = #tpu.dot_dimension_numbers<[1], [1], [0], [0], [0, 0, 1, 0], [], []>} : vector<8x128xf32>, vector<128x128xf32>, vector<8x128xf32> -> vector<8x128xf32>
    %c0_13 = arith.constant 0 : index
    %c1 = arith.constant 1 : index
    %c0_14 = arith.constant 0 : index
    %c0_15 = arith.constant 0 : index
    %13 = vector.load %arg5[%c0_13, %c1, %c0_14, %c0_15] : memref<1x2x8x128xf32, #tpu.memory_space<vmem>>, vector<1x1x8x128xf32>
    %14 = vector.shape_cast %13 : vector<1x1x8x128xf32> to vector<8x128xf32>
    %15 = vector.shape_cast %12 : vector<8x128xf32> to vector<1x1x8x128xf32>
    tpu.vector_store %arg5[%c0_13, %c1, %c0_14, %c0_15], %15 {strides = array<i32>} : memref<1x2x8x128xf32, #tpu.memory_space<vmem>>, vector<1x1x8x128xf32>,
    return
  }
  func.func @transform_0(%arg0: i32, %arg1: i32) -> (i32, i32, i32) {
    %c0_i32 = arith.constant 0 : i32
    %c0_i32_0 = arith.constant 0 : i32
    %c0_i32_1 = arith.constant 0 : i32
    return %arg1, %c0_i32, %c0_i32_0 : i32, i32, i32
  }
  func.func @transform_1(%arg0: i32, %arg1: i32) -> (i32, i32, i32) {
    %c0_i32 = arith.constant 0 : i32
    %c0_i32_0 = arith.constant 0 : i32
    %c0_i32_1 = arith.constant 0 : i32
    return %arg1, %c0_i32, %c0_i32_0 : i32, i32, i32
  }
  func.func @transform_2(%arg0: i32, %arg1: i32) -> (i32, i32) {
    %c0_i32 = arith.constant 0 : i32
    %c0_i32_0 = arith.constant 0 : i32
    return %c0_i32, %arg0 : i32, i32
  }
  func.func @transform_3(%arg0: i32, %arg1: i32) -> (i32, i32, i32, i32) {
    %c0_i32 = arith.constant 0 : i32
    %c0_i32_0 = arith.constant 0 : i32
    %c0_i32_1 = arith.constant 0 : i32
    return %arg1, %arg0, %c0_i32, %c0_i32_0 : i32, i32, i32, i32
  }
}

</mosaic_0001>

<bundles_post_ra>
// kernel: tpu_custom_call.1
= control target key start
LH: loop header
LB: loop body
LE: loop exit
PB: predicated region body
PF: predicated region fallthrough
CT: control target
= control target key end

     0   :  { %s1770_s0 = inlined_call_operand.hbm [shape: f32[2,8,128], index: 0, kind: input, shape index: {}]   ;;  %s1771_s1 = inlined_call_operand.hbm [shape: f32[2,128,128], index: 1, kind: input, shape index: {}]   ;;  %s1772_s2 = inlined_call_operand.hbm [shape: f32[128,512], index: 2, kind: input, shape index: {}]   ;;  %s1773_s3 = inlined_call_operand.hbm [shape: f32[2,4,8,128], index: 3, kind: output, shape index: {}]  }
   0x1   :  { %1786 = sst [smem:[#allocation21_spill]] %s1771_s1 }
   0x2   :  { %1787 = sst [smem:[#allocation22_spill]] %s1773_s3 }
   0x3   :  { %8 = vsyncpa [#allocation3], 0 }
   0x4   :  { %10 = vsyncpa [#allocation3 + $0x1], 0 }
   0x5   :  { %11 = vsyncpa [#allocation6], 0 }
   0x6   :  { %13 = vsyncpa [#allocation6 + $0x1], 0 }
   0x7   :  { %14 = vsyncpa [#allocation4], 0 }
   0x8   :  { %16 = vsyncpa [#allocation4 + $0x1], 0  ;;  %s1324_s12 = smov 0   ;;  %s1326_s13 = smov 0  }
   0x9   :  { %s1328_s14 = smov 0   ;;  %s1330_s15 = smov 0  }
   0xa   :  { %s1332_s16 = smov 0   ;;  %s1334_s17 = smov 0  }
   0xb   :  { %s1336_s18 = smov 0   ;;  %s1338_s19 = smov 0  }
   0xc   :  { %s1340_s20 = smov 0   ;;  %s1342_s21 = smov 0  }
   0xd   :  { %s1344_s22 = smov 0   ;;  %s1346_s23 = smov 0  }
   0xe   :  { %s1348_s24 = smov 0   ;;  %s1350_s25 = smov 0  }
   0xf LB: > { %1788 = sst [smem:[#allocation13_spill]] %s1236_s12  ;;  %s1393_s26 = sadd.s32 4294967295, %s1288_s25   ;;  %s1288_s25 = sphi %s1350_s25, %s22_s25   ;;  %s1284_s24 = sphi %s1348_s24, %s1835_s24   ;;  %s1280_s23 = sphi %s1346_s23, %s1834_s23   ;;  %s1276_s22 = sphi %s1344_s22, %s1833_s22   ;;  %s1272_s21 = sphi %s1342_s21, %s1832_s21   ;;  %s1268_s20 = sphi %s1340_s20, %s1821_s20   ;;  %s1264_s19 = sphi %s1338_s19, %s1831_s19   ;;  %s1260_s18 = sphi %s1336_s18, %s1830_s18   ;;  %s1256_s17 = sphi %s1334_s17, %s1829_s17   ;;  %s1252_s16 = sphi %s1332_s16, %s1828_s16   ;;  %s1248_s15 = sphi %s1330_s15, %s1827_s15   ;;  %s1244_s14 = sphi %s1328_s14, %s1819_s14   ;;  %s1240_s13 = sphi %s1326_s13, %s1826_s13   ;;  %s1236_s12 = sphi %s1324_s12, %s1825_s12  }
  0x10   : > { %1789 = sst [smem:[#allocation14_spill]] %s1244_s14  ;;  %s689_s27 = sadd.s32 4294967294, %s1288_s25  }
  0x11   : > { %1790 = sst [smem:[#allocation15_spill]] %s1268_s20  ;;  %s31_s28 = sadd.s32 1, %s1280_s23 }
  0x12   : > { %s34_s29 = sadd.s32 1, %s1284_s24  ;;  %p32_p0 = scmp.ge.s32.totalorder %s31_s28, 2 }
  0x13   : > { %s41_s30 = sadd.s32 1, %s1268_s20  ;;  %p48_p1 = scmp.ne.s32.totalorder %s1268_s20, %s1264_s19 }
  0x14   : > { %p1782_p2 = scmp.eq.s32.totalorder %s1288_s25, 0  ;;  %s1837_s28 = smov (%p32_p0, %s31_s28), 0 }
  0x15   : > { %1791 = sst [smem:[#allocation16_spill]] %s1837_s28  ;;  %s1839_s29 = smov (!%p32_p0, %s34_s29), %s1284_s24 }
  0x16   : > { %s38_s4 = ssub.s32 %s1280_s23, %s1837_s28  ;;  %p1409_p3 = por %p1782_p2, %p48_p1 }
  0x17   : > { %p36_p4 = scmp.ge.s32.totalorder %s1839_s29, 2  ;;  %p39_p5 = scmp.eq.s32.totalorder %s38_s4, 0 }
  0x18   : > { %p54_p6 = scmp.ne.s32.totalorder %s1264_s19, %s1260_s18  ;;  %p1781_p7 = scmp.eq.s32.totalorder %s1393_s26, 0 }
  0x19   : > { %s1841_s29 = smov (%p36_p4, %s1839_s29), 0  ;;  %s121_s10 = sadd.s32 1, %s1244_s14 }
  0x1a   : > { %1793 = sst [smem:[#allocation17_spill]] %s1841_s29  ;;  %p1422_p8 = por %p1781_p7, %p54_p6 }
  0x1b   : > { %s1418_s6 = scalar_select %p39_p5, %s1268_s20, %s41_s30  }
  0x1c   : > { %s1795_s7 = scalar_select %p1422_p8, 1, 0 }
  0x1d   : > { %1794 = sst [smem:[#allocation18_spill]] %s1418_s6  ;;  %s1428_s8 = ssub.s32 %s1284_s24, %s1841_s29 }
  0x1e   : > { %s118_s9 = sor.u32 %s1428_s8, %s38_s4  ;;  %p131_p11 = scmp.ne.s32.totalorder %s1244_s14, %s1240_s13 }
  0x1f   : > { %p119_p10 = scmp.eq.s32.totalorder %s118_s9, 0  ;;  %p132_p12 = scmp.eq.s32.totalorder %s1393_s26, 3 }
  0x20   : > { %p137_p0 = scmp.ne.s32.totalorder %s1240_s13, %s1236_s12  ;;  %p138_p1 = scmp.eq.s32.totalorder %s689_s27, 3 }
  0x21   : > { %s1437_s11 = scalar_select %p119_p10, %s1244_s14, %s121_s10  }
  0x22   : > { %p1439_p13 = por %p132_p12, %p131_p11  ;;  %p1780_p4 = scmp.lt.s32.totalorder %s1288_s25, 4 }
  0x23   : > { %1796 = sst [smem:[#allocation19_spill]] %s1437_s11  ;;  %s1447_s30 = sand.u32 1, %s1268_s20  }
  0x24   : > { %s1797_s18 = scalar_select %p1439_p13, 1, 0 }
  0x25   : > { %p1449_p5 = por %p138_p1, %p137_p0  ;;  %s176_s4 = sand.u32 1, %s1288_s25  }
  0x26   : > { %p1458_p6 = pnand %p1780_p4, %p1409_p3  ;;  %s694_s10 = sshll.u32 %s1447_s30, 7 }
  0x27   : > { %s1798_s29 = scalar_select %p1449_p5, 1, 0 }
  0x28   : > { %s712_s28 = sshll.u32 %s1280_s23, 11  ;;  %s1801_s1 = sld [smem:[#allocation21_spill]] }
  0x29   : > { %1799 = sst [smem:[#allocation20_spill]] %s1798_s29  ;;  %s180_s11 = scalar_lea.vmem [#allocation5], %s694_s10 }
  0x2a   : > { %s187_s5 = sshll.u32 %s180_s11, 4  ;;  %s1472_s14 = scalar_lea.sflag [#allocation6], %s176_s4  ;;  %s1469_s5 = int_to_ptr.vmem [resolvable:$true] %s187_s5 }
  0x2b   : > { %p1046_p11 = pneg %p1458_p6 }
  0x2e   : > { %s1467_s20 = scalar_lea.hbm %s1801_s1, %s712_s28  ;;  %s1049_s27 = scalar_lea.hbm %s1801_s1, 4096 }
  0x2f   : > { %s1044_s29 = scalar_lea.hbm %s1467_s20, 2048  ;;  %p1050_p1 = scmp.lt.u32.totalorder %s1467_s20, %s1801_s1 }
  0x30   : > { %p1045_p10 = scmp.ne.s32.totalorder %s1467_s20, %s1044_s29  ;;  %p1051_p4 = scmp.lt.u32.totalorder %s1049_s27, %s1044_s29 }
  0x31   : > { %p1053_p2 = scmp.lt.u32.totalorder %s1044_s29, %s1467_s20 }
  0x32   : > { %p1047_p12 = pnand %p1046_p11, %p1045_p10  ;;  %p1052_p7 = por %p1051_p4, %p1050_p1 }
  0x34   : > { %p1048_p0 = pneg %p1047_p12  ;;  %p1054_p9 = por %p1053_p2, %p1052_p7 }
  0x36   : > { %p1055_p3 = pnand %p1054_p9, %p1048_p0 }
  0x38   : > { %1058 = shalt.err (!%p1055_p3)
}
  0x39   : > { %s1059_s11 = scalar_lea.vmem %s1469_s5, 2048  ;;  %s1290_s4 = smov [#allocation5]  }
  0x3a   : > { %p1060_p10 = scmp.ne.s32.totalorder %s1469_s5, %s1059_s11  ;;  %s1064_s28 = sshll.u32 %s1290_s4, 4  ;;  %s1065_s28 = int_to_ptr.vmem [resolvable:$false] %s1064_s28 }
  0x3b   : > { %s1066_s12 = scalar_lea.vmem %s1065_s28, 4096  ;;  %p1067_p13 = scmp.lt.s32.totalorder %s1469_s5, %s1065_s28 }
  0x3c   : > { %p1062_p12 = pnand %p1060_p10, %p1046_p11  ;;  %p1068_p4 = scmp.lt.s32.totalorder %s1066_s12, %s1059_s11 }
  0x3e   : > { %p1063_p5 = pneg %p1062_p12  ;;  %p1069_p1 = por %p1068_p4, %p1067_p13 }
  0x40   : > { %p1070_p2 = pnand %p1069_p1, %p1063_p5 }
  0x42   : > { %1073 = shalt.err (!%p1070_p2)
}
  0x43   : > { %s1291_s29 = smov 128   ;;  %s1292_s6 = smov 8  }
  0x44   : > { %912 = dma.hbm_to_vmem [thread:$0]  (!%p1458_p6), %s1467_s20, 2048, %s1469_s5, %s1472_s14, %s1291_s29, %s1291_s29, %s1292_s6  }
  0x45   : > { %p216_p7 = scmp.lt.s32.totalorder %s1288_s25, 5  ;;  %p1802_p9 = scmp.ge.s32.totalorder %s1288_s25, 1 }
  0x46   : > { %s692_s10 = sshll.u32 %s1447_s30, 3  ;;  %s693_s11 = sshll.u32 %s1280_s23, 7 }
  0x47   : > { %p1503_p3 = pnand %p1802_p9, %p216_p7  ;;  %s1512_s12 = scalar_lea.hbm %s1770_s0, %s693_s11 }
  0x48   : > { %s162_s1 = scalar_lea.vmem [#allocation2], %s692_s10  ;;  %s159_s20 = scalar_lea.sflag [#allocation3], %s1447_s30 }
  0x49   : > { %s1803_s27 = scalar_select %p1503_p3, 1, 0 }
  0x4a   : > { %s169_s3 = sshll.u32 %s162_s1, 4  ;;  %s1074_s5 = scalar_lea.hbm %s1512_s12, 128  ;;  %s170_s3 = int_to_ptr.vmem [resolvable:$true] %s169_s3 }
  0x4b   : > { %p1075_p13 = scmp.ne.s32.totalorder %s1512_s12, %s1074_s5  ;;  %s1079_s4 = scalar_lea.hbm %s1770_s0, 256 }
  0x4c   : > { %p1080_p10 = scmp.lt.u32.totalorder %s1512_s12, %s1770_s0  ;;  %p1081_p12 = scmp.lt.u32.totalorder %s1079_s4, %s1074_s5 }
  0x4d   : > { %p1077_p5 = pnand %p1075_p13, %p1046_p11  ;;  %p1083_p1 = scmp.lt.u32.totalorder %s1074_s5, %s1512_s12 }
  0x4e   : > { %p1082_p4 = por %p1081_p12, %p1080_p10 }
  0x4f   : > { %p1078_p0 = pneg %p1077_p5 }
  0x50   : > { %p1084_p2 = por %p1083_p1, %p1082_p4 }
  0x52   : > { %p1085_p7 = pnand %p1084_p2, %p1078_p0 }
  0x54   : > { %1088 = shalt.err (!%p1085_p7)
}
  0x55   : > { %s1089_s1 = scalar_lea.vmem %s170_s3, 128  ;;  %s1293_s30 = smov [#allocation2]  }
  0x56   : > { %p1090_p9 = scmp.ne.s32.totalorder %s170_s3, %s1089_s1  ;;  %s1094_s10 = sshll.u32 %s1293_s30, 4  ;;  %s1095_s10 = int_to_ptr.vmem [resolvable:$false] %s1094_s10 }
  0x57   : > { %s1096_s29 = scalar_lea.vmem %s1095_s10, 256  ;;  %p1097_p8 = scmp.lt.s32.totalorder %s170_s3, %s1095_s10 }
  0x58   : > { %p1092_p13 = pnand %p1090_p9, %p1046_p11  ;;  %p1098_p3 = scmp.lt.s32.totalorder %s1096_s29, %s1089_s1 }
  0x5a   : > { %p1093_p5 = pneg %p1092_p13  ;;  %p1099_p10 = por %p1098_p3, %p1097_p8 }
  0x5c   : > { %p1100_p12 = pnand %p1099_p10, %p1093_p5 }
  0x5e   : > { %1103 = shalt.err (!%p1100_p12)
}
  0x5f   : > { %909 = dma.hbm_to_vmem [thread:$0]  (!%p1458_p6), %s1512_s12, 128, %s170_s3, %s159_s20  }
  0x60   : > { %s93_s5 = sadd.s32 1, %s1256_s17  ;;  %p1804_p8 = scmp.eq.s32.totalorder %s1428_s8, 0 }
  0x61   : > { %p100_p11 = scmp.ne.s32.totalorder %s1256_s17, %s1252_s16  ;;  %p106_p3 = scmp.ne.s32.totalorder %s1252_s16, %s1248_s15 }
  0x62   : > { %s1538_s6 = scalar_select %p1804_p8, %s1256_s17, %s93_s5  }
  0x63   : > { %s199_s9 = sand.u32 1, %s1256_s17   ;;  %s713_s4 = sshll.u32 %s1284_s24, 8 }
  0x64   : > { %p1805_p0 = scmp.eq.s32.totalorder %s1288_s25, 0  ;;  %p1806_p1 = scmp.eq.s32.totalorder %s1393_s26, 0 }
  0x65   : > { %s697_s28 = sshll.u32 %s199_s9, 8  ;;  %s1557_s3 = scalar_lea.hbm %s1772_s2, %s713_s4 }
  0x66   : > { %p102_p4 = por %p100_p11, %p1805_p0  ;;  %p1550_p2 = por %p106_p3, %p1806_p1 }
  0x67   : > { %p1808_p6 = scmp.lt.s32.totalorder %s1288_s25, 4  ;;  %s201_s8 = scalar_lea.vmem [#allocation7], %s697_s28 }
  0x68   : > { %s208_s12 = sshll.u32 %s201_s8, 4  ;;  %s1104_s20 = scalar_lea.hbm %s1557_s3, 4096  ;;  %s1565_s12 = int_to_ptr.vmem [resolvable:$true] %s208_s12 }
  0x69   : > { %p1561_p7 = pnand %p1808_p6, %p102_p4  ;;  %p1105_p9 = scmp.ne.s32.totalorder %s1557_s3, %s1104_s20 }
  0x6a   : > { %s1109_s5 = scalar_lea.hbm %s1772_s2, 8192  ;;  %p1110_p12 = scmp.lt.u32.totalorder %s1557_s3, %s1772_s2 }
  0x6b   : > { %p1106_p13 = pneg %p1561_p7  ;;  %p1111_p8 = scmp.lt.u32.totalorder %s1109_s5, %s1104_s20 }
  0x6c   : > { %p1113_p3 = scmp.lt.u32.totalorder %s1104_s20, %s1557_s3 }
  0x6d   : > { %p1107_p5 = pnand %p1106_p13, %p1105_p9  ;;  %p1112_p11 = por %p1111_p8, %p1110_p12 }
  0x6f   : > { %p1108_p10 = pneg %p1107_p5  ;;  %p1114_p0 = por %p1113_p3, %p1112_p11 }
  0x71   : > { %p1115_p4 = pnand %p1114_p0, %p1108_p10 }
  0x73   : > { %1118 = shalt.err (!%p1115_p4)
}
  0x74   : > { %s1119_s28 = scalar_lea.vmem %s1565_s12, 4096  ;;  %s1294_s1 = smov [#allocation7]  }
  0x75   : > { %p1120_p1 = scmp.ne.s32.totalorder %s1565_s12, %s1119_s28  ;;  %s1124_s30 = sshll.u32 %s1294_s1, 4  ;;  %s1125_s30 = int_to_ptr.vmem [resolvable:$false] %s1124_s30 }
  0x76   : > { %s1126_s8 = scalar_lea.vmem %s1125_s30, 8192  ;;  %p1127_p5 = scmp.lt.s32.totalorder %s1565_s12, %s1125_s30 }
  0x77   : > { %p1122_p6 = pnand %p1120_p1, %p1106_p13  ;;  %p1128_p12 = scmp.lt.s32.totalorder %s1126_s8, %s1119_s28 }
  0x79   : > { %p1123_p9 = pneg %p1122_p6  ;;  %p1129_p8 = por %p1128_p12, %p1127_p5 }
  0x7b   : > { %p1130_p11 = pnand %p1129_p8, %p1123_p9 }
  0x7d   : > { %1133 = shalt.err (!%p1130_p11)
}
  0x7e   : > { %s1295_s20 = smov 512   ;;  %s1296_s10 = smov 256  }
  0x7f   : > { %s1297_s29 = smov 16   ;;  %p1810_p13 = scmp.ne.s32.totalorder %s1803_s27, 0 }
  0x80   : > { %915 = dma.hbm_to_vmem [thread:$0]  (!%p1561_p7), %s1557_s3, 4096, %s1565_s12, %s1472_s14, %s1295_s20, %s1296_s10, %s1297_s29  }
  0x81   : > { %220 = sbr.rel (%p1810_p13) target bundleno = 619 (0x26b), region = 32  ;;  %s222_s5 = sand.u32 (!%p1810_p13), 1, %s1264_s19  }
  0x82   : > { %s701_s9 = sshll.u32 (!%p1810_p13), %s222_s5, 3  ;;  %s223_s4 = scalar_lea.sflag (!%p1810_p13), [#allocation3], %s222_s5 }
  0x83   : > { %s1596_s28 = scalar_lea.vmem (!%p1810_p13), [#allocation2], %s701_s9  ;;  %p1811_p10 = scmp.ne.s32.totalorder (!%p1810_p13), %s1795_s7, 0 }
  0x88   : > { %1219 = dma.done.wait (%p1811_p10), %s223_s4, 128  }
  0x89   : > { %1221 = vsyncadd (%p1811_p10), %s223_s4, 4294967168  ;;  %s231_s1 = sand.u32 1, %s1393_s26   ;;  %s702_s15 = sshll.u32 %s222_s5, 7 }
  0x8a   : > { %s232_s14 = scalar_lea.sflag [#allocation6], %s231_s1  ;;  %s1603_s3 = scalar_lea.vmem [#allocation5], %s702_s15 }
  0x8b   : > { %1223 = dma.done.wait (%p1811_p10), %s232_s14, 2048  }
  0x8c   : > { %1225 = vsyncadd (%p1811_p10), %s232_s14, 4294965248  ;;  %s242_s27 = sand.u32 1, %s1252_s16  }
  0x8d   : > { %s703_s12 = sshll.u32 %s242_s27, 8 }
  0x8e   : > { %s1610_s30 = scalar_lea.vmem [#allocation7], %s703_s12 }
  0x8f   : > { %1227 = dma.done.wait (%p1550_p2), %s232_s14, 4096  }
  0x90   : > { %1229 = vsyncadd (%p1550_p2), %s232_s14, 4294963200  ;;  %v1298_v0 = vmov 0.0   ;;  %v1299_v1 = vmov 0.0|0.0   ;;  %v297_v2 = vld [vmem:[%s1610_s30 + $0x8] sm:$0xff]  ;;  %v299_v3 = vld [vmem:[%s1610_s30 + $0x18] sm:$0xff]  ;;  %vm1300_vm0 = vmmov 0  }
  0x91   : > { %392 = vmatprep.mubr.f32.mxu0 %v1298_v0  ;;  %850 = vmatprep.subr.bf16.mxu1 %v1299_v1  ;;  %v296_v4 = vld [vmem:[%s1610_s30] sm:$0xff]  ;;  %v818_v5 = vpack.c.bf16 %v299_v3, %v297_v2  ;;  %v298_v6 = vld [vmem:[%s1610_s30 + $0x10] sm:$0xff]  ;;  %v301_v7 = vld [vmem:[%s1610_s30 + $0x28] sm:$0xff]  ;;  %s274_s26 = sand.u32 1, %s1240_s13   ;;  %s707_s11 = sshll.u32 %s1276_s22, 1 }
  0x92   : > { %v303_v8 = vld [vmem:[%s1610_s30 + $0x38] sm:$0xff]  ;;  %v820_v9 = vpack.c.bf16 %v298_v6, %v296_v4  ;;  %v300_v11 = vld [vmem:[%s1610_s30 + $0x20] sm:$0xff]  ;;  %v302_v12 = vld [vmem:[%s1610_s30 + $0x30] sm:$0xff]  ;;  %780 = vmatprep.mubr.msk.f32.mxu1 %vm1300_vm0, %v1298_v0  ;;  %s704_s7 = sshll.u32 %s274_s26, 4  ;;  %s708_s8 = sshll.u32 %s1272_s21, 2 }
  0x93   : > { %v822_v10 = vpack.c.bf16 %v303_v8, %v301_v7  ;;  %v305_v13 = vld [vmem:[%s1610_s30 + $0x48] sm:$0xff]  ;;  %819 = vmatprep.subr.bf16.mxu0 %v818_v5  ;;  %v307_v14 = vld [vmem:[%s1610_s30 + $0x58] sm:$0xff]  ;;  %v824_v15 = vpack.c.bf16 %v302_v12, %v300_v11  ;;  %v304_v17 = vld [vmem:[%s1610_s30 + $0x40] sm:$0xff]  ;;  %s555_s20 = sadd.s32 %s708_s8, %s707_s11  ;;  %s276_s10 = scalar_lea.vmem [#allocation8], %s704_s7 }
  0x94   : > { %821 = vmatpush1.bf16.msra.mxu0 %v820_v9  ;;  %v826_v16 = vpack.c.bf16 %v307_v14, %v305_v13  ;;  %v306_v18 = vld [vmem:[%s1610_s30 + $0x50] sm:$0xff]  ;;  %v309_v19 = vld [vmem:[%s1610_s30 + $0x68] sm:$0xff]  ;;  %v311_v20 = vld [vmem:[%s1610_s30 + $0x78] sm:$0xff]  ;;  %s558_s29 = sshll.u32 %s276_s10, 4  ;;  %s709_s5 = sshll.u32 %s555_s20, 7  ;;  %s1687_s29 = int_to_ptr.vmem [resolvable:$true] %s558_s29 }
  0x95   : > { %823 = vmatprep.subr.bf16.mxu0 %v822_v10  ;;  %v828_v21 = vpack.c.bf16 %v306_v18, %v304_v17  ;;  %v830_v22 = vpack.c.bf16 %v311_v20, %v309_v19  ;;  %v308_v23 = vld [vmem:[%s1610_s30 + $0x60] sm:$0xff]  ;;  %v310_v24 = vld [vmem:[%s1610_s30 + $0x70] sm:$0xff]  ;;  %v313_v25 = vld [vmem:[%s1610_s30 + $0x88] sm:$0xff]  ;;  %s1694_s21 = scalar_lea.sflag [#allocation4], %s274_s26  ;;  %s1134_s22 = scalar_lea.vmem %s1687_s29, 256 }
  0x96   : > { %v315_v26 = vld [vmem:[%s1610_s30 + $0x98] sm:$0xff]  ;;  %v280_v27 = vld [vmem:[%s1603_s3] sm:$0xff]  ;;  %v281_v28 = vld [vmem:[%s1603_s3 + $0x8] sm:$0xff]  ;;  %v832_v29 = vpack.c.bf16 %v310_v24, %v308_v23  ;;  %p1135_p2 = scmp.ne.s32.totalorder %s1687_s29, %s1134_s22  ;;  %p1813_p7 = scmp.ne.s32.totalorder %s1797_s18, 0 }
  0x97   : > { %v851_v30 = vpack.c.bf16 %v281_v28, %v280_v27  ;;  %v834_v31 = vpack.c.bf16 %v315_v26, %v313_v25  ;;  %v312_v32 = vld [vmem:[%s1610_s30 + $0x80] sm:$0xff]  ;;  %v314_v33 = vld [vmem:[%s1610_s30 + $0x90] sm:$0xff]  ;;  %v317_v34 = vld [vmem:[%s1610_s30 + $0xa8] sm:$0xff]  ;;  %s1301_s15 = smov [#allocation8]  }
  0x98   : > { %825 = vmatpush1.bf16.msra.mxu0 %v824_v15  ;;  %v319_v35 = vld [vmem:[%s1610_s30 + $0xb8] sm:$0xff]  ;;  %v282_v36 = vld [vmem:[%s1603_s3 + $0x10] sm:$0xff]  ;;  %v836_v38 = vpack.c.bf16 %v314_v33, %v312_v32  ;;  %v316_v40 = vld [vmem:[%s1610_s30 + $0xa0] sm:$0xff]  ;;  %p1136_p3 = pnand %p1135_p2, %p1813_p7  ;;  %s1138_s14 = sshll.u32 %s1301_s15, 4  ;;  %s1139_s14 = int_to_ptr.vmem [resolvable:$false] %s1138_s14 }
  0x99   : > { %827 = vmatprep.subr.bf16.mxu0 %v826_v16  ;;  %852 = vmatpush3.bf16.xpose.msra.mxu1 %v851_v30  ;;  %v283_v37 = vld [vmem:[%s1603_s3 + $0x18] sm:$0xff]  ;;  %v838_v39 = vpack.c.bf16 %v319_v35, %v317_v34  ;;  %v318_v41 = vld [vmem:[%s1610_s30 + $0xb0] sm:$0xff]  ;;  %v321_v42 = vld [vmem:[%s1610_s30 + $0xc8] sm:$0xff]  ;;  %p1141_p4 = scmp.lt.s32.totalorder %s1687_s29, %s1139_s14 }
  0x9a   : > { %853 = vmatprep.subr.bf16.mxu1 %v1299_v1  ;;  %v323_v43 = vld [vmem:[%s1610_s30 + $0xd8] sm:$0xff]  ;;  %v854_v44 = vpack.c.bf16 %v283_v37, %v282_v36  ;;  %v840_v45 = vpack.c.bf16 %v318_v41, %v316_v40  ;;  %v320_v47 = vld [vmem:[%s1610_s30 + $0xc0] sm:$0xff]  ;;  %v322_v48 = vld [vmem:[%s1610_s30 + $0xd0] sm:$0xff]  ;;  %p1137_p0 = pneg %p1136_p3 }
  0x9b   : > { %v842_v46 = vpack.c.bf16 %v323_v43, %v321_v42  ;;  %v325_v49 = vld [vmem:[%s1610_s30 + $0xe8] sm:$0xff]  ;;  %v327_v50 = vld [vmem:[%s1610_s30 + $0xf8] sm:$0xff]  ;;  %v284_v51 = vld [vmem:[%s1603_s3 + $0x20] sm:$0xff]  ;;  %v844_v53 = vpack.c.bf16 %v322_v48, %v320_v47 }
  0x9c   : > { %829 = vmatpush1.bf16.msra.mxu0 %v828_v21  ;;  %v285_v52 = vld [vmem:[%s1603_s3 + $0x28] sm:$0xff]  ;;  %v846_v54 = vpack.c.bf16 %v327_v50, %v325_v49  ;;  %v324_v55 = vld [vmem:[%s1610_s30 + $0xe0] sm:$0xff]  ;;  %v326_v56 = vld [vmem:[%s1610_s30 + $0xf0] sm:$0xff] }
  0x9d   : > { %831 = vmatprep.subr.bf16.mxu0 %v830_v22  ;;  %v857_v57 = vpack.c.bf16 %v285_v52, %v284_v51  ;;  %v848_v58 = vpack.c.bf16 %v326_v56, %v324_v55  ;;  %v286_v59 = vld [vmem:[%s1603_s3 + $0x30] sm:$0xff]  ;;  %v287_v60 = vld [vmem:[%s1603_s3 + $0x38] sm:$0xff]  ;;  %v288_v63 = vld [vmem:[%s1603_s3 + $0x40] sm:$0xff] }
  0x9e   : > { %v279_v61 = vld [vmem:[%s1596_s28] sm:$0xff]  ;;  %v860_v62 = vpack.c.bf16 %v287_v60, %v286_v59  ;;  %v289_v2 = vld [vmem:[%s1603_s3 + $0x48] sm:$0xff]  ;;  %v292_v7 = vld [vmem:[%s1603_s3 + $0x60] sm:$0xff]  ;;  %s1812_s28 = sld [smem:[#allocation22_spill]] }
  0x9f   : > { %v863_v3 = vpack.c.bf16 %v289_v2, %v288_v63  ;;  %v290_v4 = vld [vmem:[%s1603_s3 + $0x50] sm:$0xff]  ;;  %v291_v5 = vld [vmem:[%s1603_s3 + $0x58] sm:$0xff]  ;;  %v293_v8 = vld [vmem:[%s1603_s3 + $0x68] sm:$0xff] }
  0xa0   : > { %833 = vmatpush1.bf16.msra.mxu0 %v832_v29  ;;  %v866_v6 = vpack.c.bf16 %v291_v5, %v290_v4  ;;  %v869_v9 = vpack.c.bf16 %v293_v8, %v292_v7  ;;  %v294_v10 = vld [vmem:[%s1603_s3 + $0x70] sm:$0xff]  ;;  %v295_v11 = vld [vmem:[%s1603_s3 + $0x78] sm:$0xff]  ;;  %s1140_s3 = scalar_lea.vmem %s1139_s14, 512 }
  0xa1   : > { %835 = vmatprep.subr.bf16.mxu0 %v834_v31  ;;  %855 = vmatpush3.bf16.xpose.msra.mxu1 %v854_v44  ;;  %v872_v12 = vpack.c.bf16 %v295_v11, %v294_v10  ;;  %p1142_p1 = scmp.lt.s32.totalorder %s1140_s3, %s1134_s22 }
  0xa2   : > { %856 = vmatprep.subr.bf16.mxu1 %v1299_v1 }
  0xa3   : > { %p1143_p6 = por %p1142_p1, %p1141_p4 }
  0xa4   : > { %837 = vmatpush1.bf16.msra.mxu0 %v836_v38  ;;  %s1692_s1 = scalar_lea.hbm %s1812_s28, %s709_s5 }
  0xa5   : > { %839 = vmatprep.subr.bf16.mxu0 %v838_v39  ;;  %p1144_p9 = pnand %p1143_p6, %p1137_p0 }
  0xa8   : > { %841 = vmatpush1.bf16.msra.mxu0 %v840_v45 }
  0xa9   : > { %843 = vmatprep.subr.bf16.mxu0 %v842_v46  ;;  %858 = vmatpush3.bf16.xpose.msra.mxu1 %v857_v57 }
  0xaa   : > { %859 = vmatprep.subr.bf16.mxu1 %v1299_v1 }
  0xac   : > { %845 = vmatpush1.bf16.msra.mxu0 %v844_v53 }
  0xad   : > { %847 = vmatprep.subr.bf16.mxu0 %v846_v54 }
  0xb0   : > { %849 = vmatpush1.bf16.msra.mxu0 %v848_v58 }
  0xb1   : > { %874 = vmatprep.subr.bf16.mxu0 %v1299_v1  ;;  %861 = vmatpush3.bf16.xpose.msra.mxu1 %v860_v62 }
  0xb2   : > { %862 = vmatprep.subr.bf16.mxu1 %v1299_v1 }
  0xb3   : > { %393 = vmatmul.mubr.f32.vlgmr.msra.gmra.mrb[0].mxu0 %v279_v61 }
  0xb4   : > { %815 = vmatprep.mubr.msk.f32.mxu0 %vm1300_vm0, %v1298_v0 }
  0xb9   : > { %876 = vmatpush3.bf16.xpose.msra.mxu0 %v851_v30  ;;  %864 = vmatpush3.bf16.xpose.msra.mxu1 %v863_v3 }
  0xba   : > { %877 = vmatprep.subr.bf16.mxu0 %v1299_v1  ;;  %865 = vmatprep.subr.bf16.mxu1 %v1299_v1 }
  0xc1   : > { %879 = vmatpush3.bf16.xpose.msra.mxu0 %v854_v44  ;;  %867 = vmatpush3.bf16.xpose.msra.mxu1 %v866_v6 }
  0xc2   : > { %880 = vmatprep.subr.bf16.mxu0 %v1299_v1  ;;  %868 = vmatprep.subr.bf16.mxu1 %v1299_v1 }
  0xc9   : > { %882 = vmatpush3.bf16.xpose.msra.mxu0 %v857_v57  ;;  %870 = vmatpush3.bf16.xpose.msra.mxu1 %v869_v9 }
  0xca   : > { %883 = vmatprep.subr.bf16.mxu0 %v1299_v1  ;;  %871 = vmatprep.subr.bf16.mxu1 %v1299_v1 }
  0xd1   : > { %885 = vmatpush3.bf16.xpose.msra.mxu0 %v860_v62  ;;  %873 = vmatpush3.bf16.xpose.msra.mxu1 %v872_v12 }
  0xd2   : > { %886 = vmatprep.subr.bf16.mxu0 %v1299_v1 }
  0xd9   : > { %888 = vmatpush3.bf16.xpose.msra.mxu0 %v863_v3 }
  0xda   : > { %889 = vmatprep.subr.bf16.mxu0 %v1299_v1 }
  0xe1   : > { %891 = vmatpush3.bf16.xpose.msra.mxu0 %v866_v6 }
  0xe2   : > { %892 = vmatprep.subr.bf16.mxu0 %v1299_v1 }
  0xe9   : > { %894 = vmatpush3.bf16.xpose.msra.mxu0 %v869_v9 }
  0xea   : > { %895 = vmatprep.subr.bf16.mxu0 %v1299_v1 }
  0xf1   : > { %897 = vmatpush3.bf16.xpose.msra.mxu0 %v872_v12 }
 0x186   : > { %v394_v13 = vpop.f32.mrb[0].mxu0 }
 0x187   : > { %v396_v14 = vpop.f32.mrb[1].mxu0  ;;  %781 = vmatmul.mubr.f32.vlgmr.msra.gmra.mrb[0].mxu1 %v394_v13 }
 0x188   : > { %816 = vmatmul.mubr.f32.vlgmr.msra.gmra.mrb[2].mxu0 %v396_v14 }
 0x25a   : > { %v465_v0 = vpop.f32.mrb[0].mxu1 }
 0x25b   : > { %469 = vst [vmem:[%s276_s10] sm:$0xff] %v465_v0  ;;  %v782_v1 = vpop.f32.mrb[1].mxu1  ;;  %v536_v15 = vpop.f32.mrb[2].mxu0 }
 0x25c   : > { %705 = vst [vmem:[%s276_s10 + $0x8] sm:$0xff] %v536_v15  ;;  %v817_v16 = vpop.f32.mrb[3].mxu0 }
 0x25d   : > { %1147 = shalt.err (!%p1144_p9)
}
 0x25e   : > { %s1148_s27 = scalar_lea.hbm %s1692_s1, 256  ;;  %s1152_s26 = scalar_lea.hbm %s1812_s28, 1024 }
 0x25f   : > { %p1149_p5 = scmp.ne.s32.totalorder %s1692_s1, %s1148_s27  ;;  %p1153_p11 = scmp.lt.u32.totalorder %s1692_s1, %s1812_s28 }
 0x260   : > { %p1154_p13 = scmp.lt.u32.totalorder %s1152_s26, %s1148_s27  ;;  %p1156_p2 = scmp.lt.u32.totalorder %s1148_s27, %s1692_s1 }
 0x261   : > { %p1150_p12 = pnand %p1149_p5, %p1813_p7 }
 0x262   : > { %p1155_p10 = por %p1154_p13, %p1153_p11 }
 0x263   : > { %p1151_p8 = pneg %p1150_p12 }
 0x264   : > { %p1157_p3 = por %p1156_p2, %p1155_p10 }
 0x266   : > { %p1158_p0 = pnand %p1157_p3, %p1151_p8 }
 0x268   : > { %1161 = shalt.err (!%p1158_p0)
}
 0x269   : > { %s1302_s8 = smov 128   ;;  %s1303_s20 = smov 8  }
 0x26a   : > { %904 = dma.vmem_to_hbm [thread:$0]  (%p1813_p7), %s1687_s29, 256, %s1692_s1, %s1694_s21, %s1302_s8, %s1302_s8, %s1303_s20  }
 0x26b PF: > { %s1814_s10 = sld [smem:[#allocation13_spill]]  ;;  %s1815_s5 = sld [smem:[#allocation20_spill]] }
 0x26c   : > { %p921_p4 = scmp.ge.s32.totalorder %s1288_s25, 2 }
 0x271   : > { %s573_s9 = sand.u32 1, %s1814_s10   ;;  %p1816_p1 = scmp.ne.s32.totalorder %s1815_s5, 0 }
 0x272   : > { %s574_s4 = scalar_lea.sflag [#allocation4], %s573_s9 }
 0x273   : > { %p917_p6 = pnand %p921_p4, %p1816_p1 }
 0x275   : > { %1231 = dma.done.wait (!%p917_p6), %s574_s4, 256  }
 0x276   : > { %1233 = vsyncadd (!%p917_p6), %s574_s4, 4294967040  ;;  %s22_s25 = sadd.s32 1, %s1288_s25   ;;  %s1818_s18 = sld [smem:[#allocation14_spill]] }
 0x277   : > { %p1723_p9 = scmp.ge.s32.totalorder %s22_s25, 6   ;;  %s1819_s14 = sld [smem:[#allocation19_spill]] }
 0x278   : > { %s1820_s29 = sld [smem:[#allocation15_spill]]  ;;  %s1821_s20 = sld [smem:[#allocation18_spill]] }
 0x279   : > { %s1822_s1 = sld [smem:[#allocation16_spill]]  ;;  %s1823_s3 = sld [smem:[#allocation17_spill]] }
 0x27a   : > { %s1825_s12 = smov %s1240_s13  ;;  %s1827_s15 = smov %s1252_s16 }
 0x27b   : > { %s1828_s16 = smov %s1256_s17  ;;  %s1829_s17 = smov %s1538_s6 }
 0x27c   : > { %s1826_s13 = smov %s1818_s18  ;;  %s1830_s18 = smov %s1264_s19 }
 0x27d   : > { %s1832_s21 = smov %s1280_s23  ;;  %s1833_s22 = smov %s1284_s24 }
 0x27e   : > { %s1831_s19 = smov %s1820_s29  ;;  %21 = sbr.rel (!%p1723_p9) target bundleno = 15 (0xf), region = 102 }
 0x27f   : > { %s1834_s23 = smov %s1822_s1  ;;  %s1835_s24 = smov %s1823_s3 }
 0x285   :  { %579 = vsyncpa [#allocation3], 1 }
 0x286   :  { %581 = vsyncpa [#allocation3 + $0x1], 1 }
 0x287   :  { %582 = vsyncpa [#allocation6], 1 }
 0x288   :  { %584 = vsyncpa [#allocation6 + $0x1], 1 }
 0x289   :  { %585 = vsyncpa [#allocation4], 1 }
 0x28a   :  { %587 = vsyncpa [#allocation4 + $0x1], 1 }

</bundles_post_ra>
